<compile_context>
chip_gen: v7x
topology: tpu7x:2x2x1
jax: 0.10.0
libtpu: 0.0.40
codegen_flags: <defaults>
</compile_context>

<pallas_src>
import math

import jax
import jax.numpy as jnp
from jax.experimental import pallas as pl
from jax.experimental.pallas import tpu as pltpu


# ---------------------------------------------------------------------------
# Tiling helper
# ---------------------------------------------------------------------------
def _pick_tile(dim, target, aligns=(128, 16, 8)):
    """Largest divisor of `dim` that is <= target and a multiple of one of
    `aligns` (tried in order).  Falls back to the full dim."""
    if dim <= target:
        return dim
    for align in aligns:
        t = (min(target, dim) // align) * align
        while t >= align:
            if dim % t == 0:
                return t
            t -= align
    # TODO(synk): pad awkward (non 8/128-multiple) dims instead of falling back
    # to a single giant un-pipelined block.
    return dim


# ---------------------------------------------------------------------------
# Kernel 1: tiled GEMM  y = x @ w^T   (x: (M, K), w: (N, K) torch-style)
# ---------------------------------------------------------------------------
def _matmul_nt_f32out_kernel(x_ref, w_ref, o_ref):
    # f32 output: accumulate directly into the resident output block.
    @pl.when(pl.program_id(2) == 0)
    def _():
        o_ref[...] = jnp.zeros_like(o_ref)

    o_ref[...] += jax.lax.dot_general(
        x_ref[...], w_ref[...],
        dimension_numbers=(((1,), (1,)), ((), ())),   # contract K with K (no w.T)
        preferred_element_type=jnp.float32,
    )


def _matmul_nt_acc_kernel(x_ref, w_ref, o_ref, acc_ref):
    # Narrow (e.g. bf16) output: keep an f32 VMEM accumulator, cast at the end.
    @pl.when(pl.program_id(2) == 0)
    def _():
        acc_ref[...] = jnp.zeros_like(acc_ref)

    acc_ref[...] += jax.lax.dot_general(
        x_ref[...], w_ref[...],
        dimension_numbers=(((1,), (1,)), ((), ())),
        preferred_element_type=jnp.float32,
    )

    @pl.when(pl.program_id(2) == pl.num_programs(2) - 1)
    def _():
        o_ref[...] = acc_ref[...].astype(o_ref.dtype)


def matmul_nt(x, w, out_dtype=None, *, tm_target=256, tn_target=256, tk_target=512):
    """x: (M, K), w: (N, K) -> (M, N) = x @ w^T, tiled + pipelined."""
    M, K = x.shape
    N, K2 = w.shape
    assert K == K2
    out_dtype = x.dtype if out_dtype is None else jnp.dtype(out_dtype)

    tm = _pick_tile(M, tm_target, (128, 16, 8))   # second-minor: prefer 128-mult
    tn = _pick_tile(N, tn_target, (128,))         # output lane dim: 128-mult/full
    tk = _pick_tile(K, tk_target, (128,))         # contraction lane dim
    grid = (M // tm, N // tn, K // tk)

    f32_out = out_dtype == jnp.dtype(jnp.float32)
    kernel = _matmul_nt_f32out_kernel if f32_out else _matmul_nt_acc_kernel
    scratch = [] if f32_out else [pltpu.VMEM((tm, tn), jnp.float32)]

    return pl.pallas_call(
        kernel,
        out_shape=jax.ShapeDtypeStruct((M, N), out_dtype),
        grid_spec=pltpu.PrefetchScalarGridSpec(
            num_scalar_prefetch=0,
            grid=grid,
            in_specs=[
                pl.BlockSpec((tm, tk), lambda i, j, k: (i, k)),
                pl.BlockSpec((tn, tk), lambda i, j, k: (j, k)),
            ],
            out_specs=pl.BlockSpec((tm, tn), lambda i, j, k: (i, j)),
            scratch_shapes=scratch,
        ),
        compiler_params=pltpu.CompilerParams(
            dimension_semantics=("parallel", "parallel", "arbitrary")),
    )(x, w)


# ---------------------------------------------------------------------------
# Kernel 2: flash attention over all heads of one batch per grid step
#   q, k, v : (B, H, S, hd) head-major
#   output  : (B, S, H*hd)  (head merge is a free reshape afterwards)
# ---------------------------------------------------------------------------
def _make_flash_kernel(*, scale, causal, has_mask, tq, tk, num_heads, head_dim):
    def kernel(*refs):
        if has_mask:
            q_ref, k_ref, v_ref, mask_ref, o_ref, q_sc, m_sc, l_sc, acc_sc = refs
        else:
            q_ref, k_ref, v_ref, o_ref, q_sc, m_sc, l_sc, acc_sc = refs
            mask_ref = None

        qi = pl.program_id(1)
        ki = pl.program_id(2)

        @pl.when(ki == 0)
        def _():
            # Hoisted q scaling: computed once per (b, qi), reused for every KV tile.
            q_sc[...] = q_ref[0] * scale
            m_sc[...] = jnp.full_like(m_sc, -jnp.inf)
            l_sc[...] = jnp.zeros_like(l_sc)
            acc_sc[...] = jnp.zeros_like(acc_sc)

        def block_update(apply_causal_mask):
            # Batched over heads: (H, tq, hd) x (H, tk, hd) -> (H, tq, tk).
            s = jax.lax.dot_general(
                q_sc[...], k_ref[0],
                dimension_numbers=(((2,), (2,)), ((0,), (0,))),
                preferred_element_type=jnp.float32,
            )
            if has_mask:
                s = s + mask_ref[...].astype(jnp.float32)
            if apply_causal_mask:
                rows = qi * tq + jax.lax.broadcasted_iota(jnp.int32, (tq, tk), 0)
                cols = ki * tk + jax.lax.broadcasted_iota(jnp.int32, (tq, tk), 1)
                s = jnp.where(cols <= rows, s, -1e30)

            m_prev = m_sc[...]
            m_new = jnp.maximum(m_prev, jnp.max(s, axis=-1, keepdims=True))
            alpha = jnp.exp(m_prev - m_new)
            p = jnp.exp(s - m_new)                               # f32 numerator
            l_sc[...] = alpha * l_sc[...] + jnp.sum(p, axis=-1, keepdims=True)
            pv = jax.lax.dot_general(
                p.astype(v_ref.dtype), v_ref[0],                 # softmax(...).type_as(q)
                dimension_numbers=(((2,), (1,)), ((0,), (0,))),
                preferred_element_type=jnp.float32,
            )                                                    # (H, tq, hd)
            acc_sc[...] = alpha * acc_sc[...] + pv
            m_sc[...] = m_new

        if causal:
            # Skip fully-masked KV blocks; apply the iota mask only on blocks
            # that straddle the diagonal.
            block_needed = ki * tk <= qi * tq + (tq - 1)
            fully_unmasked = ki * tk + (tk - 1) <= qi * tq

            @pl.when(jnp.logical_and(block_needed, fully_unmasked))
            def _():
                block_update(False)

            @pl.when(jnp.logical_and(block_needed, jnp.logical_not(fully_unmasked)))
            def _():
                block_update(True)
        else:
            block_update(False)

        @pl.when(ki == pl.num_programs(2) - 1)
        def _():
            # Guarded approximate reciprocal (EUP slot).
            inv_l = pl.reciprocal(jnp.maximum(l_sc[...], 1e-30), approx=True)
            out = acc_sc[...] * inv_l                            # (H, tq, hd) f32
            # Head-merge store: write each head into its D-slice of the
            # (1, tq, H*hd) output block -> lane-dense HBM writeback, no
            # post-attention XLA transpose.
            for h in range(num_heads):                           # static unroll
                o_ref[0, :, h * head_dim:(h + 1) * head_dim] = (
                    out[h].astype(o_ref.dtype))

    return kernel


def flash_attention(q, k, v, mask2d, *, causal, out_dtype=None,
                    tq_target=256, tk_target=256):
    """q, k, v: (B, H, S, hd) head-major; mask2d: (S, S) additive or None.

    Returns attention output in (B, S, H*hd) layout.
    """
    B, H, S, hd = q.shape
    out_dtype = q.dtype if out_dtype is None else jnp.dtype(out_dtype)
    if causal:
        mask2d = None
    has_mask = mask2d is not None
    scale = 1.0 / math.sqrt(hd)

    tq = _pick_tile(S, tq_target, (128, 16, 8))
    # With an explicit mask the (tq, tk) mask block makes tk a lane dim.
    tk = _pick_tile(S, tk_target, (128,) if has_mask else (128, 16, 8))
    grid = (B, S // tq, S // tk)

    kernel = _make_flash_kernel(scale=scale, causal=causal, has_mask=has_mask,
                                tq=tq, tk=tk, num_heads=H, head_dim=hd)

    in_specs = [
        pl.BlockSpec((1, H, tq, hd), lambda b, qi, ki: (b, 0, qi, 0)),
        pl.BlockSpec((1, H, tk, hd), lambda b, qi, ki: (b, 0, ki, 0)),
        pl.BlockSpec((1, H, tk, hd), lambda b, qi, ki: (b, 0, ki, 0)),
    ]
    args = [q, k, v]
    if has_mask:
        in_specs.append(pl.BlockSpec((tq, tk), lambda b, qi, ki: (qi, ki)))
        args.append(mask2d)

    return pl.pallas_call(
        kernel,
        out_shape=jax.ShapeDtypeStruct((B, S, H * hd), out_dtype),
        grid_spec=pltpu.PrefetchScalarGridSpec(
            num_scalar_prefetch=0,
            grid=grid,
            in_specs=in_specs,
            out_specs=pl.BlockSpec((1, tq, H * hd), lambda b, qi, ki: (b, qi, 0)),
            scratch_shapes=[
                pltpu.VMEM((H, tq, hd), q.dtype),       # q * scale (hoisted)
                pltpu.VMEM((H, tq, 1), jnp.float32),    # running max m
                pltpu.VMEM((H, tq, 1), jnp.float32),    # running denom l
                pltpu.VMEM((H, tq, hd), jnp.float32),   # f32 output accumulator
            ],
        ),
        compiler_params=pltpu.CompilerParams(
            dimension_semantics=("parallel", "parallel", "arbitrary")),
    )(*args)


# ---------------------------------------------------------------------------
# Param fusion (done once at init, not per call)
# ---------------------------------------------------------------------------
def fuse_attention_params(params):
    """Concatenate wq/wk/wv -> one (3D, D) weight for a single fused GEMM."""
    return {
        "w_qkv": jnp.concatenate([params["wq"], params["wk"], params["wv"]], axis=0),
        "wo": params["wo"],
    }


# ---------------------------------------------------------------------------
# Full Attention.forward equivalent
# ---------------------------------------------------------------------------
def attention_forward(x, mask, fused_params, head_num, *,
                      causal=False, compute_dtype=jnp.bfloat16):
    """x: (B, S, D); mask: (1,1,S,S)/(S,S) additive bias or None.

    If causal=True the standard GPT-2 lower-triangular mask is generated
    in-kernel (mask argument ignored) and fully-masked KV blocks are skipped.
    MXU operands run in `compute_dtype`; softmax stats / accumulation in f32.
    """
    B, S, D = x.shape
    H = head_num
    hd = D // H
    cdt = jnp.dtype(compute_dtype)

    # In production these casts happen once at init (no-op if already cdt).
    w_qkv = fused_params["w_qkv"].astype(cdt)
    wo = fused_params["wo"].astype(cdt)

    x2d = x.reshape(B * S, D).astype(cdt)
    qkv = matmul_nt(x2d, w_qkv, out_dtype=cdt)                   # (B*S, 3D)

    # Head split. TODO(synk): this transpose is one HBM round trip; it could be
    # folded into the QKV GEMM by scattering head-major column blocks via
    # out_specs (tn = multiple of hd) at the cost of lane-sliced in-kernel stores.
    qkv = qkv.reshape(B, S, 3, H, hd).transpose(2, 0, 3, 1, 4)   # (3, B, H, S, hd)
    q, k, v = qkv[0], qkv[1], qkv[2]

    if causal or mask is None:
        mask2d = None
    else:
        mask2d = jnp.asarray(mask, dtype=jnp.float32).reshape(S, S)

    # Flash output comes back already in (B, S, H*hd) == (B, S, D) layout:
    # head merge is a free reshape (no second HBM transpose).
    out = flash_attention(q, k, v, mask2d, causal=causal, out_dtype=cdt)

    out = matmul_nt(out.reshape(B * S, D), wo, out_dtype=x.dtype)
    return out.reshape(B, S, D)


# ---------------------------------------------------------------------------
# Pure-JAX reference for a sanity check
# ---------------------------------------------------------------------------
def attention_reference(x, mask, params, head_num):
    B, S, D = x.shape
    hd = D // head_num
    xq = x @ params["wq"].T
    xk = x @ params["wk"].T
    xv = x @ params["wv"].T
    q = xq.reshape(B, S, head_num, hd).transpose(0, 2, 1, 3)
    k = xk.reshape(B, S, head_num, hd).transpose(0, 2, 1, 3)
    v = xv.reshape(B, S, head_num, hd).transpose(0, 2, 1, 3)
    scores = jnp.einsum("bhqd,bhkd->bhqk", q, k) / math.sqrt(hd)
    if mask is not None:
        scores = scores + jnp.asarray(mask).reshape(1, 1, S, S)
    p = jax.nn.softmax(scores.astype(jnp.float32), axis=-1).astype(q.dtype)
    o = jnp.einsum("bhqk,bhkd->bhqd", p, v)
    o = o.transpose(0, 2, 1, 3).reshape(B, S, D)
    return o @ params["wo"].T


if __name__ == "__main__":
    # Small shapes consistent with the module: batch=2, seq=8, dim=32, heads=4
    B, S, D, H = 2, 8, 32, 4

    key = jax.random.PRNGKey(0)
    kx, kq, kk, kv, ko = jax.random.split(key, 5)

    x = jax.random.normal(kx, (B, S, D), dtype=jnp.float32)

    # Deterministic parameter init (torch Linear convention: (out, in))
    params = {
        "wq": 0.02 * jax.random.normal(kq, (D, D), dtype=jnp.float32),
        "wk": 0.02 * jax.random.normal(kk, (D, D), dtype=jnp.float32),
        "wv": 0.02 * jax.random.normal(kv, (D, D), dtype=jnp.float32),
        "wo": 0.02 * jax.random.normal(ko, (D, D), dtype=jnp.float32),
    }
    fused_params = fuse_attention_params(params)   # once at init

    # GPT-2 style additive causal mask, shape (1, 1, S, S)
    causal_keep = jnp.tril(jnp.ones((S, S), dtype=jnp.float32))
    mask = jnp.where(causal_keep == 1.0, 0.0, -1e9).reshape(1, 1, S, S)

    ref = attention_reference(x, mask, params, head_num=H)

    # 1) General additive-mask path, full f32 compute (tight tolerance).
    out_masked = attention_forward(x, mask, fused_params, head_num=H,
                                   causal=False, compute_dtype=jnp.float32)
    out_masked = jax.block_until_ready(out_masked)
    assert out_masked.shape == (B, S, D)
    assert jnp.allclose(out_masked, ref, atol=2e-3, rtol=2e-3), \
        "masked f32 path mismatch vs reference"

    # 2) Fast path: in-kernel causal mask + fully-masked-block skipping,
    #    bf16 MXU operands with f32 accumulation (looser tolerance).
    out_causal = attention_forward(x, None, fused_params, head_num=H,
                                   causal=True, compute_dtype=jnp.bfloat16)
    out_causal = jax.block_until_ready(out_causal)
    assert out_causal.shape == (B, S, D)
    assert jnp.allclose(out_causal, ref, atol=2e-2, rtol=2e-2), \
        "causal bf16 path mismatch vs reference"

    print("KERNEL_OK")
</pallas_src>

<mosaic_0001>
module attributes {stable_mosaic.version = 11 : i64} {
  func.func @_matmul_nt_f32out_kernel(%arg0: i32, %arg1: i32, %arg2: i32, %arg3: memref<16x32xf32, #tpu.memory_space<vmem>>, %arg4: memref<96x32xf32, #tpu.memory_space<vmem>>, %arg5: memref<16x96xf32, #tpu.memory_space<vmem>>) attributes {dimension_semantics = [#tpu.dimension_semantics<parallel>, #tpu.dimension_semantics<parallel>, #tpu.dimension_semantics<arbitrary>], iteration_bounds = array<i64: 1, 1, 1>, scalar_prefetch = 0 : i64, scratch_operands = 0 : i64, tpu.core_type = #tpu.core_type<tc>, window_params = [{transform_indices = @transform_0, window_bounds = array<i64: 16, 32>}, {transform_indices = @transform_1, window_bounds = array<i64: 96, 32>}, {transform_indices = @transform_2, window_bounds = array<i64: 16, 96>}]} {
    %c0_i32 = arith.constant 0 : i32
    %0 = arith.cmpi eq, %arg2, %c0_i32 : i32
    %1 = arith.extui %0 : i1 to i32
    %c0_i32_0 = arith.constant 0 : i32
    %2 = arith.cmpi ne, %1, %c0_i32_0 : i32
    scf.if %2 {
      %cst_8 = arith.constant 0.000000e+00 : f32
      %9 = vector.broadcast %cst_8 : f32 to vector<16x96xf32>
      %c0_9 = arith.constant 0 : index
      %c0_10 = arith.constant 0 : index
      %10 = vector.load %arg5[%c0_9, %c0_10] : memref<16x96xf32, #tpu.memory_space<vmem>>, vector<16x96xf32>
      tpu.vector_store %arg5[%c0_9, %c0_10], %9 {strides = array<i32>} : memref<16x96xf32, #tpu.memory_space<vmem>>, vector<16x96xf32>,
    } else {
    }
    %c0 = arith.constant 0 : index
    %c0_1 = arith.constant 0 : index
    %3 = vector.load %arg5[%c0, %c0_1] : memref<16x96xf32, #tpu.memory_space<vmem>>, vector<16x96xf32>
    %c0_2 = arith.constant 0 : index
    %c0_3 = arith.constant 0 : index
    %4 = vector.load %arg3[%c0_2, %c0_3] : memref<16x32xf32, #tpu.memory_space<vmem>>, vector<16x32xf32>
    %c0_4 = arith.constant 0 : index
    %c0_5 = arith.constant 0 : index
    %5 = vector.load %arg4[%c0_4, %c0_5] : memref<96x32xf32, #tpu.memory_space<vmem>>, vector<96x32xf32>
    %cst = arith.constant dense<0.000000e+00> : vector<16x96xf32>
    %6 = tpu.matmul %4, %5, %cst {dimension_numbers = #tpu.dot_dimension_numbers<[1], [1], [0], [0], [0, 0, 1, 0], [], []>} : vector<16x32xf32>, vector<96x32xf32>, vector<16x96xf32> -> vector<16x96xf32>
    %7 = arith.addf %3, %6 : vector<16x96xf32>
    %c0_6 = arith.constant 0 : index
    %c0_7 = arith.constant 0 : index
    %8 = vector.load %arg5[%c0_6, %c0_7] : memref<16x96xf32, #tpu.memory_space<vmem>>, vector<16x96xf32>
    tpu.vector_store %arg5[%c0_6, %c0_7], %7 {strides = array<i32>} : memref<16x96xf32, #tpu.memory_space<vmem>>, vector<16x96xf32>,
    return
  }
  func.func @transform_0(%arg0: i32, %arg1: i32, %arg2: i32) -> (i32, i32) {
    %c0_i32 = arith.constant 0 : i32
    return %arg0, %arg2 : i32, i32
  }
  func.func @transform_1(%arg0: i32, %arg1: i32, %arg2: i32) -> (i32, i32) {
    %c0_i32 = arith.constant 0 : i32
    return %arg1, %arg2 : i32, i32
  }
  func.func @transform_2(%arg0: i32, %arg1: i32, %arg2: i32) -> (i32, i32) {
    %c0_i32 = arith.constant 0 : i32
    return %arg0, %arg1 : i32, i32
  }
}

</mosaic_0001>

<bundles_post_ra>
// kernel: tpu_custom_call.1
= control target key start
LH: loop header
LB: loop body
LE: loop exit
PB: predicated region body
PF: predicated region fallthrough
CT: control target
= control target key end

     0   :  { %vm35_vm0 = vcmask 261120   ;;  %vm16_vm1 = vcmask 785408   ;;  %v293_v6 = vmov 0.0   ;;  %s402_s0 = inlined_call_operand.vmem [shape: f32[16,32], index: 0, kind: input, shape index: {}]   ;;  %s403_s1 = inlined_call_operand.vmem [shape: f32[96,32], index: 1, kind: input, shape index: {}]   ;;  %s404_s2 = inlined_call_operand.hbm [shape: f32[16,96], index: 2, kind: output, shape index: {}]  }
   0x1   :  { %v23_v0 = vld [vmem:[%s403_s1] sm:$0xff]  ;;  %v24_v1 = vld [vmem:[%s403_s1 + $0x8] sm:$0xff]  ;;  %v25_v2 = vld [vmem:[%s403_s1 + $0x10] sm:$0xff]  ;;  %18 = vst.msk [vmem:[#allocation2 + $0x8] sm:$0xff] %vm16_vm1, %v293_v6 }
   0x2   :  { %v229_v3 = vpack.c.bf16 %v24_v1, %v23_v0  ;;  %vm323_vm2 = vmpackc.low %vm35_vm0, %vm35_vm0  ;;  %v26_v5 = vld [vmem:[%s403_s1 + $0x18] sm:$0xff]  ;;  %17 = vst.msk [vmem:[#allocation2] sm:$0xff] %vm16_vm1, %v293_v6  ;;  %v21_v8 = vld [vmem:[%s402_s0] sm:$0xff] }
   0x3   :  { %v235_v7 = vpack.c.bf16 %v26_v5, %v25_v2  ;;  %226 = vmatprep.mubr.msk.f32.mxu0 %vm35_vm0, %v21_v8 }
   0x4   :  { %231 = vmatprep.subr.msk.bf16.mxu0 %vm323_vm2, %v229_v3 }
   0x5   :  { %234 = vmatpush3.bf16.xpose.msk.msra.mxu0 %vm323_vm2, %v229_v3 }
   0x6   :  { %237 = vmatprep.subr.msk.bf16.mxu0 %vm323_vm2, %v235_v7 }
   0x7   :  { %7 = vsyncpa [#allocation3], 0  ;;  %v27_v9 = vld [vmem:[%s403_s1 + $0x20] sm:$0xff]  ;;  %v28_v10 = vld [vmem:[%s403_s1 + $0x28] sm:$0xff]  ;;  %s294_s9 = smov [#allocation2]  }
   0x8   :  { %v241_v11 = vpack.c.bf16 %v28_v10, %v27_v9  ;;  %v29_v12 = vld [vmem:[%s403_s1 + $0x30] sm:$0xff]  ;;  %v30_v13 = vld [vmem:[%s403_s1 + $0x38] sm:$0xff]  ;;  %v31_v15 = vld [vmem:[%s403_s1 + $0x40] sm:$0xff]  ;;  %s163_s10 = sshll.u32 %s294_s9, 4  ;;  %s164_s10 = int_to_ptr.vmem [resolvable:$true] %s163_s10 }
   0x9   :  { %v247_v14 = vpack.c.bf16 %v30_v13, %v29_v12  ;;  %v32_v16 = vld [vmem:[%s403_s1 + $0x48] sm:$0xff]  ;;  %v33_v18 = vld [vmem:[%s403_s1 + $0x50] sm:$0xff]  ;;  %v34_v19 = vld [vmem:[%s403_s1 + $0x58] sm:$0xff]  ;;  %s269_s1 = scalar_lea.vmem %s164_s10, 256  ;;  %p274_p1 = scmp.lt.s32.totalorder %s164_s10, %s164_s10 }
   0xa   :  { %v253_v17 = vpack.c.bf16 %v32_v16, %v31_v15  ;;  %v259_v20 = vpack.c.bf16 %v34_v19, %v33_v18  ;;  %v22_v21 = vld [vmem:[%s402_s0 + $0x8] sm:$0xff]  ;;  %v19_v23 = vld [vmem:[#allocation2] sm:$0xff]  ;;  %p270_p0 = scmp.ne.s32.totalorder %s164_s10, %s269_s1  ;;  %p275_p2 = scmp.lt.s32.totalorder %s269_s1, %s269_s1 }
   0xb   :  { %v20_v22 = vld [vmem:[#allocation2 + $0x8] sm:$0xff] }
   0xc   :  { %p276_p3 = por %p275_p2, %p274_p1 }
   0xd   :  { %240 = vmatpush3.bf16.xpose.msk.msra.mxu0 %vm323_vm2, %v235_v7 }
   0xe   :  { %243 = vmatprep.subr.msk.bf16.mxu0 %vm323_vm2, %v241_v11  ;;  %p277_p4 = pnand %p276_p3, %p270_p0 }
  0x15   :  { %246 = vmatpush3.bf16.xpose.msk.msra.mxu0 %vm323_vm2, %v241_v11 }
  0x16   :  { %249 = vmatprep.subr.msk.bf16.mxu0 %vm323_vm2, %v247_v14 }
  0x1d   :  { %252 = vmatpush3.bf16.xpose.msk.msra.mxu0 %vm323_vm2, %v247_v14 }
  0x1e   :  { %255 = vmatprep.subr.msk.bf16.mxu0 %vm323_vm2, %v253_v17 }
  0x25   :  { %258 = vmatpush3.bf16.xpose.msk.msra.mxu0 %vm323_vm2, %v253_v17 }
  0x26   :  { %261 = vmatprep.subr.msk.bf16.mxu0 %vm323_vm2, %v259_v20 }
  0x2d   :  { %264 = vmatpush3.bf16.xpose.msk.msra.mxu0 %vm323_vm2, %v259_v20 }
  0x34   :  { %227 = vmatmul.mubr.msk.f32.vlgmr.msra.gmra.mrb[0].mxu0 %vm35_vm0, %v22_v21 }
 0x107   :  { %v228_v24 = vpop.f32.mrb[0].mxu0 }
 0x108   :  { %v154_v25 = vadd.f32 %v228_v24, %v20_v22  ;;  %v144_v26 = vpop.f32.mrb[1].mxu0 }
 0x109   :  { %v153_v27 = vadd.f32 %v144_v26, %v19_v23 }
 0x10a   :  { %157 = vst.msk [vmem:[#allocation2 + $0x8] sm:$0xff] %vm16_vm1, %v154_v25 }
 0x10b   :  { %156 = vst.msk [vmem:[#allocation2] sm:$0xff] %vm16_vm1, %v153_v27 }
 0x10c   :  { %280 = shalt.err (!%p277_p4)
}
 0x10d   :  { %s281_s12 = scalar_lea.hbm %s404_s2, 256 }
 0x10e   :  { %p282_p5 = scmp.ne.s32.totalorder %s404_s2, %s281_s12  ;;  %p285_p6 = scmp.lt.u32.totalorder %s281_s12, %s404_s2 }
 0x110   :  { %p287_p7 = pnand %p285_p6, %p282_p5 }
 0x112   :  { %290 = shalt.err (!%p287_p7)
}
 0x113   :  { %s295_s17 = smov 128   ;;  %s296_s18 = smov 8  }
 0x114   :  { %169 = dma.vmem_to_hbm [thread:$0]  %s164_s10, 256, %s404_s2, [#allocation3], %s295_s17, %s295_s17, %s296_s18  }
 0x115   :  { %291 = dma.done.wait [#allocation3], 256  }
 0x116   :  { %292 = vsyncadd [#allocation3], 4294967040 }
 0x117   :  { %173 = vsyncpa [#allocation3], 1 }

</bundles_post_ra>
